<compile_context>
chip_gen: v7x
topology: tpu7x:2x2x1
jax: 0.10.0
libtpu: 0.0.40
codegen_flags: <defaults>
</compile_context>

<pallas_src>
import functools

import jax
import jax.numpy as jnp
from jax.experimental import pallas as pl
from jax.experimental.pallas import tpu as pltpu


def _round_up(x, m):
    return (x + m - 1) // m * m


# ---------------------------------------------------------------------------
# Pallas kernel: one graph per grid step.
# ---------------------------------------------------------------------------
def _gnn_child_encoder_kernel(num_iterations, f_in, hidden, edge_type_num,
                              num_childs, num_edges, s0, si,
                              act_ref, w_all_ref, w_par_ref, out_ref):
    f32 = jnp.float32
    bf16 = jnp.bfloat16
    H = hidden
    T = edge_type_num
    C = num_childs
    E = num_edges

    # single packed activation slab: rows [0:C] = child rows, [C:C+E] = edge rows
    act = act_ref[...]                                   # (C+E, width)
    cf = act[:C, :f_in]                                  # (C, f_in)
    ce = act[:C, f_in:f_in + 1]                          # (C, 1)  child_exists
    from_oh_t = act[:C, f_in + 1:f_in + 1 + E]           # (C, E)  scatter mask
    g = act[C:C + E, :2 * C + T]                         # (E, 2C+T) [from|to|etype]
    g_bf = g.astype(bf16)

    wc = w_all_ref[0:f_in, :]                            # (f_in, H)
    bc = w_all_ref[f_in:f_in + 1, :]                     # (1, H)

    # child_op + ReLU, masked by child_exists.
    h = jnp.dot(cf.astype(bf16), wc.astype(bf16),
                preferred_element_type=f32) + bc
    h = jnp.maximum(h, 0.0) * ce                         # (C, H), >= 0

    # node pooling ('max') per stage, accumulated for the final parent matmul.
    parents = [jnp.max(h, axis=0, keepdims=True)]        # (1, H)

    sel = from_oh_t[:, :, None]                          # (C, E, 1)

    for i in range(num_iterations):                      # static unroll
        base = s0 + i * si
        wf = w_all_ref[base:base + H, :]                 # (H, H)
        wt = w_all_ref[base + H:base + 2 * H, :]         # (H, H)
        we = w_all_ref[base + 2 * H:base + 2 * H + T, :]           # (T, H)
        bne = w_all_ref[base + 2 * H + T:base + 2 * H + T + 1, :]  # (1, H)

        # node_edge_op[i]: gathers folded into one big matmul:
        #   [h_from | h_to | e_onehot] @ [Wf; Wt; We]
        #     == [from_oh | to_oh | e_onehot] @ [h@Wf ; h@Wt ; We]
        h_bf = h.astype(bf16)
        m = jnp.concatenate(
            [jnp.dot(h_bf, wf.astype(bf16), preferred_element_type=f32),
             jnp.dot(h_bf, wt.astype(bf16), preferred_element_type=f32),
             we], axis=0)                                # (2C + T, H)
        ne = jnp.dot(g_bf, m.astype(bf16), preferred_element_type=f32) + bne
        ne = jnp.maximum(ne, 0.0)                        # (E, H), >= 0

        # scatter_max keyed by the 'from' index as one fused masked reduce.
        # Only valid because ne >= 0 (post-ReLU) and the torch scatter target
        # is zero-initialised; revisit if the activation ever changes.
        h = jnp.max(sel * ne[None, :, :], axis=1)        # (C, H)

        parents.append(jnp.max(h, axis=0, keepdims=True))

    # parent_op: single K=(I+1)*H matmul + bias + ReLU, lane-padded to 128.
    pf = jnp.concatenate(parents, axis=1)                # (1, (I+1)*H)
    rp = (num_iterations + 1) * H
    wp = w_par_ref[0:rp, :]                              # ((I+1)*H, f_out_pad)
    bp = w_par_ref[rp:rp + 1, :]                         # (1, f_out_pad)
    out = jnp.dot(pf.astype(bf16), wp.astype(bf16),
                  preferred_element_type=f32) + bp
    out_ref[...] = jnp.maximum(out, 0.0)                 # (1, f_out_pad)


# ---------------------------------------------------------------------------
# Wrapper: slab packing + grid over graphs.
# ---------------------------------------------------------------------------
def gnn_child_encoder(child_feats, child_exists, edge_type_onehot, edge_indices,
                      params, num_iterations):
    f32 = jnp.float32
    cf = child_feats.astype(f32)             # (B, C, f_in)
    ce = child_exists.astype(f32)            # (B, C, 1)
    et = edge_type_onehot.astype(f32)        # (B, E, T)
    ei = edge_indices                        # (B, E, 2) int

    B, C, f_in = cf.shape
    E = ei.shape[1]
    T = et.shape[-1]
    w_child = params["w_child"].astype(f32)  # (f_in, H)
    H = w_child.shape[1]
    f_out = params["b_parent"].shape[-1]
    I = num_iterations

    # ---- one packed activation slab (1 DMA per graph) ----
    from_oh = jax.nn.one_hot(ei[..., 0], C, dtype=f32)   # (B, E, C)
    to_oh = jax.nn.one_hot(ei[..., 1], C, dtype=f32)     # (B, E, C)
    w_c = f_in + 1 + E
    w_e = 2 * C + T
    width = max(w_c, w_e)
    rows_c = jnp.concatenate([cf, ce, jnp.swapaxes(from_oh, -1, -2)], axis=-1)
    rows_e = jnp.concatenate([from_oh, to_oh, et], axis=-1)
    rows_c = jnp.pad(rows_c, ((0, 0), (0, 0), (0, width - w_c)))
    rows_e = jnp.pad(rows_e, ((0, 0), (0, 0), (0, width - w_e)))
    act = jnp.concatenate([rows_c, rows_e], axis=1)      # (B, C+E, width)

    # ---- weight slabs (fetched once: block index constant across grid) ----
    s0 = _round_up(f_in + 1, 8)
    si = _round_up(2 * H + T + 1, 8)
    w_all = jnp.zeros((s0 + I * si, H), f32)
    w_all = w_all.at[:f_in].set(w_child)
    w_all = w_all.at[f_in:f_in + 1].set(params["b_child"].astype(f32))
    for i in range(I):
        base = s0 + i * si
        w_all = w_all.at[base:base + 2 * H + T].set(
            params["w_ne_full"][i].astype(f32))           # [Wf; Wt; We]
        w_all = w_all.at[base + 2 * H + T:base + 2 * H + T + 1].set(
            params["b_ne"][i].astype(f32))
    rp = (I + 1) * H
    f_out_pad = _round_up(f_out, 128)                     # lane-dense store
    w_par = jnp.zeros((_round_up(rp + 1, 8), f_out_pad), f32)
    w_par = w_par.at[:rp, :f_out].set(params["w_parent_full"].astype(f32))
    w_par = w_par.at[rp:rp + 1, :f_out].set(params["b_parent"].astype(f32))

    kernel = functools.partial(_gnn_child_encoder_kernel,
                               I, f_in, H, T, C, E, s0, si)

    out = pl.pallas_call(
        kernel,
        out_shape=jax.ShapeDtypeStruct((B, 1, f_out_pad), f32),
        grid=(B,),
        in_specs=[
            pl.BlockSpec((None, C + E, width), lambda b: (b, 0, 0)),
            pl.BlockSpec(w_all.shape, lambda b: (0, 0)),
            pl.BlockSpec(w_par.shape, lambda b: (0, 0)),
        ],
        out_specs=pl.BlockSpec((None, 1, f_out_pad), lambda b: (b, 0, 0)),
        compiler_params=pltpu.CompilerParams(
            dimension_semantics=("parallel",)),
    )(act, w_all, w_par)
    return out[:, 0, :f_out]                              # (B, f_out)


# ---------------------------------------------------------------------------
# Pure-JAX reference (mirrors the PyTorch forward, 'max'/'max' symmetric types)
# ---------------------------------------------------------------------------
def reference_forward(child_feats, child_exists, edge_type_onehot, edge_indices,
                      raw, num_iterations):
    hi = jax.lax.Precision.HIGHEST
    outs = []
    for b in range(child_feats.shape[0]):
        cf = child_feats[b]
        ce = child_exists[b]
        et = edge_type_onehot[b]
        ei = edge_indices[b]

        h = jax.nn.relu(jnp.matmul(cf, raw["w_child"], precision=hi)
                        + raw["b_child"]) * ce
        parents = [jnp.max(h, axis=0)]
        for i in range(num_iterations):
            x = jnp.concatenate([h[ei[:, 0]], h[ei[:, 1]], et], axis=1)
            ne = jax.nn.relu(jnp.matmul(x, raw["w_ne_full"][i], precision=hi)
                             + raw["b_ne"][i])
            h = jnp.zeros_like(h).at[ei[:, 0]].max(ne)    # scatter_max, 0-init
            parents.append(jnp.max(h, axis=0))
        pf = jnp.concatenate(parents)[None, :]
        outs.append(jax.nn.relu(
            jnp.matmul(pf, raw["w_parent_full"], precision=hi)
            + raw["b_parent"]))
    return jnp.concatenate(outs, axis=0)


# ---------------------------------------------------------------------------
# Main
# ---------------------------------------------------------------------------
if __name__ == "__main__":
    node_feat_size = 16
    num_sem = 8           # stand-in for Tree.num_sem
    hidden_size = 32
    max_childs = 8
    num_edges = 8
    edge_type_num = 4
    num_iterations = 2
    batch = 4             # graphs processed via a parallel grid axis
    f_in = node_feat_size + num_sem

    key = jax.random.PRNGKey(0)
    keys = jax.random.split(key, 10)

    # Deterministic synthetic parameters (transposed: (in, out)).
    w_child = 0.1 * jax.random.normal(keys[0], (f_in, hidden_size), jnp.float32)
    b_child = 0.1 * jax.random.normal(keys[1], (1, hidden_size), jnp.float32)
    w_ne_full = 0.1 * jax.random.normal(
        keys[2], (num_iterations, 2 * hidden_size + edge_type_num, hidden_size),
        jnp.float32)
    b_ne = 0.1 * jax.random.normal(keys[3], (num_iterations, 1, hidden_size),
                                   jnp.float32)
    w_parent_full = 0.1 * jax.random.normal(
        keys[4], (hidden_size * (num_iterations + 1), node_feat_size),
        jnp.float32)
    b_parent = 0.1 * jax.random.normal(keys[5], (1, node_feat_size), jnp.float32)

    params = dict(w_child=w_child, b_child=b_child, w_ne_full=w_ne_full,
                  b_ne=b_ne, w_parent_full=w_parent_full, b_parent=b_parent)

    # Deterministic example inputs (batch of independent graphs).
    child_feats = jax.random.normal(keys[6], (batch, max_childs, f_in),
                                    jnp.float32)
    child_counts = jnp.array([6, 8, 3, 5])
    child_exists = (jnp.arange(max_childs)[None, :, None]
                    < child_counts[:, None, None]).astype(jnp.float32)
    edge_type_ids = jax.random.randint(keys[7], (batch, num_edges),
                                       0, edge_type_num)
    edge_type_onehot = jax.nn.one_hot(edge_type_ids, edge_type_num,
                                      dtype=jnp.float32)
    edge_indices = jax.random.randint(keys[8], (batch, num_edges, 2),
                                      0, max_childs, dtype=jnp.int32)

    out = gnn_child_encoder(child_feats, child_exists, edge_type_onehot,
                            edge_indices, params, num_iterations)
    out = jax.block_until_ready(out)

    ref = reference_forward(child_feats, child_exists, edge_type_onehot,
                            edge_indices, params, num_iterations)
    ref = jax.block_until_ready(ref)

    # Kernel runs bf16 MXU passes with f32 accumulation; reference is f32
    # at HIGHEST precision, hence the slightly relaxed tolerance.
    if not bool(jnp.allclose(out, ref, atol=2e-2, rtol=2e-2)):
        raise RuntimeError(
            f"mismatch: max abs diff = {jnp.max(jnp.abs(out - ref))}")

    print("KERNEL_OK")
</pallas_src>

<mosaic_0001>
module attributes {stable_mosaic.version = 11 : i64} {
  func.func @_gnn_child_encoder_kernel(%arg0: i32, %arg1: memref<1x16x33xf32, #tpu.memory_space<vmem>>, %arg2: memref<176x32xf32, #tpu.memory_space<vmem>>, %arg3: memref<104x128xf32, #tpu.memory_space<vmem>>, %arg4: memref<1x1x128xf32, #tpu.memory_space<vmem>>) attributes {dimension_semantics = [#tpu.dimension_semantics<parallel>], iteration_bounds = array<i64: 4>, scalar_prefetch = 0 : i64, scratch_operands = 0 : i64, tpu.core_type = #tpu.core_type<tc>, window_params = [{transform_indices = @transform_0, window_bounds = array<i64: 1, 16, 33>}, {pipeline_mode = #tpu.pipeline_mode<synchronous>, transform_indices = @transform_1, window_bounds = array<i64: 176, 32>}, {pipeline_mode = #tpu.pipeline_mode<synchronous>, transform_indices = @transform_2, window_bounds = array<i64: 104, 128>}, {transform_indices = @transform_3, window_bounds = array<i64: 1, 1, 128>}]} {
    %c0 = arith.constant 0 : index
    %c0_0 = arith.constant 0 : index
    %c0_1 = arith.constant 0 : index
    %0 = vector.load %arg1[%c0, %c0_0, %c0_1] : memref<1x16x33xf32, #tpu.memory_space<vmem>>, vector<1x16x33xf32>
    %1 = vector.shape_cast %0 : vector<1x16x33xf32> to vector<16x33xf32>
    %2 = vector.extract_strided_slice %1 {offsets = [0, 0], sizes = [8, 24], strides = [1, 1]} : vector<16x33xf32> to vector<8x24xf32>
    %3 = vector.extract_strided_slice %1 {offsets = [0, 24], sizes = [8, 1], strides = [1, 1]} : vector<16x33xf32> to vector<8x1xf32>
    %4 = vector.extract_strided_slice %1 {offsets = [0, 25], sizes = [8, 8], strides = [1, 1]} : vector<16x33xf32> to vector<8x8xf32>
    %5 = vector.extract_strided_slice %1 {offsets = [8, 0], sizes = [8, 20], strides = [1, 1]} : vector<16x33xf32> to vector<8x20xf32>
    %6 = arith.truncf %5 : vector<8x20xf32> to vector<8x20xbf16>
    %c0_2 = arith.constant 0 : index
    %c0_3 = arith.constant 0 : index
    %7 = vector.load %arg2[%c0_2, %c0_3] : memref<176x32xf32, #tpu.memory_space<vmem>>, vector<24x32xf32>
    %c24 = arith.constant 24 : index
    %c0_4 = arith.constant 0 : index
    %8 = vector.load %arg2[%c24, %c0_4] : memref<176x32xf32, #tpu.memory_space<vmem>>, vector<1x32xf32>
    %9 = arith.truncf %2 : vector<8x24xf32> to vector<8x24xbf16>
    %10 = arith.truncf %7 : vector<24x32xf32> to vector<24x32xbf16>
    %cst = arith.constant dense<0.000000e+00> : vector<8x32xf32>
    %11 = tpu.matmul %9, %10, %cst {dimension_numbers = #tpu.dot_dimension_numbers<[1], [0], [0], [1], [0, 0, 1, 1], [], []>} : vector<8x24xbf16>, vector<24x32xbf16>, vector<8x32xf32> -> vector<8x32xf32>
    %12 = vector.broadcast %8 : vector<1x32xf32> to vector<8x32xf32>
    %13 = arith.addf %11, %12 : vector<8x32xf32>
    %cst_5 = arith.constant 0.000000e+00 : f32
    %14 = vector.broadcast %cst_5 : f32 to vector<8x32xf32>
    %15 = arith.maximumf %13, %14 : vector<8x32xf32>
    %16 = vector.broadcast %3 : vector<8x1xf32> to vector<8x32xf32>
    %17 = arith.mulf %15, %16 : vector<8x32xf32>
    %cst_6 = arith.constant dense<0xFF800000> : vector<32xf32>
    %18 = vector.multi_reduction <maximumf>, %17, %cst_6 [0] : vector<8x32xf32> to vector<32xf32>
    %19 = vector.shape_cast %18 : vector<32xf32> to vector<1x32xf32>
    %20 = vector.shape_cast %4 : vector<8x8xf32> to vector<8x8x1xf32>
    %c32 = arith.constant 32 : index
    %c0_7 = arith.constant 0 : index
    %21 = vector.load %arg2[%c32, %c0_7] : memref<176x32xf32, #tpu.memory_space<vmem>>, vector<32x32xf32>
    %c64 = arith.constant 64 : index
    %c0_8 = arith.constant 0 : index
    %22 = vector.load %arg2[%c64, %c0_8] : memref<176x32xf32, #tpu.memory_space<vmem>>, vector<32x32xf32>
    %c96 = arith.constant 96 : index
    %c0_9 = arith.constant 0 : index
    %23 = vector.load %arg2[%c96, %c0_9] : memref<176x32xf32, #tpu.memory_space<vmem>>, vector<4x32xf32>
    %c100 = arith.constant 100 : index
    %c0_10 = arith.constant 0 : index
    %24 = vector.load %arg2[%c100, %c0_10] : memref<176x32xf32, #tpu.memory_space<vmem>>, vector<1x32xf32>
    %25 = arith.truncf %17 : vector<8x32xf32> to vector<8x32xbf16>
    %26 = arith.truncf %21 : vector<32x32xf32> to vector<32x32xbf16>
    %cst_11 = arith.constant dense<0.000000e+00> : vector<8x32xf32>
    %27 = tpu.matmul %25, %26, %cst_11 {dimension_numbers = #tpu.dot_dimension_numbers<[1], [0], [0], [1], [0, 0, 1, 1], [], []>} : vector<8x32xbf16>, vector<32x32xbf16>, vector<8x32xf32> -> vector<8x32xf32>
    %28 = arith.truncf %22 : vector<32x32xf32> to vector<32x32xbf16>
    %cst_12 = arith.constant dense<0.000000e+00> : vector<8x32xf32>
    %29 = tpu.matmul %25, %28, %cst_12 {dimension_numbers = #tpu.dot_dimension_numbers<[1], [0], [0], [1], [0, 0, 1, 1], [], []>} : vector<8x32xbf16>, vector<32x32xbf16>, vector<8x32xf32> -> vector<8x32xf32>
    %30 = tpu.concatenate %27, %29, %23 in 0 : vector<8x32xf32>, vector<8x32xf32>, vector<4x32xf32> -> vector<20x32xf32>
    %31 = arith.truncf %30 : vector<20x32xf32> to vector<20x32xbf16>
    %cst_13 = arith.constant dense<0.000000e+00> : vector<8x32xf32>
    %32 = tpu.matmul %6, %31, %cst_13 {dimension_numbers = #tpu.dot_dimension_numbers<[1], [0], [0], [1], [0, 0, 1, 1], [], []>} : vector<8x20xbf16>, vector<20x32xbf16>, vector<8x32xf32> -> vector<8x32xf32>
    %33 = vector.broadcast %24 : vector<1x32xf32> to vector<8x32xf32>
    %34 = arith.addf %32, %33 : vector<8x32xf32>
    %cst_14 = arith.constant 0.000000e+00 : f32
    %35 = vector.broadcast %cst_14 : f32 to vector<8x32xf32>
    %36 = arith.maximumf %34, %35 : vector<8x32xf32>
    %37 = vector.shape_cast %36 : vector<8x32xf32> to vector<1x8x32xf32>
    %38 = vector.broadcast %20 : vector<8x8x1xf32> to vector<8x8x32xf32>
    %39 = vector.broadcast %37 : vector<1x8x32xf32> to vector<8x8x32xf32>
    %40 = arith.mulf %38, %39 : vector<8x8x32xf32>
    %cst_15 = arith.constant dense<0xFF800000> : vector<8x32xf32>
    %41 = vector.multi_reduction <maximumf>, %40, %cst_15 [1] : vector<8x8x32xf32> to vector<8x32xf32>
    %cst_16 = arith.constant dense<0xFF800000> : vector<32xf32>
    %42 = vector.multi_reduction <maximumf>, %41, %cst_16 [0] : vector<8x32xf32> to vector<32xf32>
    %43 = vector.shape_cast %42 : vector<32xf32> to vector<1x32xf32>
    %c104 = arith.constant 104 : index
    %c0_17 = arith.constant 0 : index
    %44 = vector.load %arg2[%c104, %c0_17] : memref<176x32xf32, #tpu.memory_space<vmem>>, vector<32x32xf32>
    %c136 = arith.constant 136 : index
    %c0_18 = arith.constant 0 : index
    %45 = vector.load %arg2[%c136, %c0_18] : memref<176x32xf32, #tpu.memory_space<vmem>>, vector<32x32xf32>
    %c168 = arith.constant 168 : index
    %c0_19 = arith.constant 0 : index
    %46 = vector.load %arg2[%c168, %c0_19] : memref<176x32xf32, #tpu.memory_space<vmem>>, vector<4x32xf32>
    %c172 = arith.constant 172 : index
    %c0_20 = arith.constant 0 : index
    %47 = vector.load %arg2[%c172, %c0_20] : memref<176x32xf32, #tpu.memory_space<vmem>>, vector<1x32xf32>
    %48 = arith.truncf %41 : vector<8x32xf32> to vector<8x32xbf16>
    %49 = arith.truncf %44 : vector<32x32xf32> to vector<32x32xbf16>
    %cst_21 = arith.constant dense<0.000000e+00> : vector<8x32xf32>
    %50 = tpu.matmul %48, %49, %cst_21 {dimension_numbers = #tpu.dot_dimension_numbers<[1], [0], [0], [1], [0, 0, 1, 1], [], []>} : vector<8x32xbf16>, vector<32x32xbf16>, vector<8x32xf32> -> vector<8x32xf32>
    %51 = arith.truncf %45 : vector<32x32xf32> to vector<32x32xbf16>
    %cst_22 = arith.constant dense<0.000000e+00> : vector<8x32xf32>
    %52 = tpu.matmul %48, %51, %cst_22 {dimension_numbers = #tpu.dot_dimension_numbers<[1], [0], [0], [1], [0, 0, 1, 1], [], []>} : vector<8x32xbf16>, vector<32x32xbf16>, vector<8x32xf32> -> vector<8x32xf32>
    %53 = tpu.concatenate %50, %52, %46 in 0 : vector<8x32xf32>, vector<8x32xf32>, vector<4x32xf32> -> vector<20x32xf32>
    %54 = arith.truncf %53 : vector<20x32xf32> to vector<20x32xbf16>
    %cst_23 = arith.constant dense<0.000000e+00> : vector<8x32xf32>
    %55 = tpu.matmul %6, %54, %cst_23 {dimension_numbers = #tpu.dot_dimension_numbers<[1], [0], [0], [1], [0, 0, 1, 1], [], []>} : vector<8x20xbf16>, vector<20x32xbf16>, vector<8x32xf32> -> vector<8x32xf32>
    %56 = vector.broadcast %47 : vector<1x32xf32> to vector<8x32xf32>
    %57 = arith.addf %55, %56 : vector<8x32xf32>
    %cst_24 = arith.constant 0.000000e+00 : f32
    %58 = vector.broadcast %cst_24 : f32 to vector<8x32xf32>
    %59 = arith.maximumf %57, %58 : vector<8x32xf32>
    %60 = vector.shape_cast %59 : vector<8x32xf32> to vector<1x8x32xf32>
    %61 = vector.broadcast %20 : vector<8x8x1xf32> to vector<8x8x32xf32>
    %62 = vector.broadcast %60 : vector<1x8x32xf32> to vector<8x8x32xf32>
    %63 = arith.mulf %61, %62 : vector<8x8x32xf32>
    %cst_25 = arith.constant dense<0xFF800000> : vector<8x32xf32>
    %64 = vector.multi_reduction <maximumf>, %63, %cst_25 [1] : vector<8x8x32xf32> to vector<8x32xf32>
    %cst_26 = arith.constant dense<0xFF800000> : vector<32xf32>
    %65 = vector.multi_reduction <maximumf>, %64, %cst_26 [0] : vector<8x32xf32> to vector<32xf32>
    %66 = vector.shape_cast %65 : vector<32xf32> to vector<1x32xf32>
    %67 = tpu.concatenate %19, %43, %66 in 1 : vector<1x32xf32>, vector<1x32xf32>, vector<1x32xf32> -> vector<1x96xf32>
    %c0_27 = arith.constant 0 : index
    %c0_28 = arith.constant 0 : index
    %68 = vector.load %arg3[%c0_27, %c0_28] : memref<104x128xf32, #tpu.memory_space<vmem>>, vector<96x128xf32>
    %c96_29 = arith.constant 96 : index
    %c0_30 = arith.constant 0 : index
    %69 = vector.load %arg3[%c96_29, %c0_30] : memref<104x128xf32, #tpu.memory_space<vmem>>, vector<1x128xf32>
    %70 = arith.truncf %67 : vector<1x96xf32> to vector<1x96xbf16>
    %71 = arith.truncf %68 : vector<96x128xf32> to vector<96x128xbf16>
    %cst_31 = arith.constant dense<0.000000e+00> : vector<1x128xf32>
    %72 = tpu.matmul %70, %71, %cst_31 {dimension_numbers = #tpu.dot_dimension_numbers<[1], [0], [0], [1], [0, 0, 1, 1], [], []>} : vector<1x96xbf16>, vector<96x128xbf16>, vector<1x128xf32> -> vector<1x128xf32>
    %73 = arith.addf %72, %69 : vector<1x128xf32>
    %cst_32 = arith.constant 0.000000e+00 : f32
    %74 = vector.broadcast %cst_32 : f32 to vector<1x128xf32>
    %75 = arith.maximumf %73, %74 : vector<1x128xf32>
    %c0_33 = arith.constant 0 : index
    %c0_34 = arith.constant 0 : index
    %c0_35 = arith.constant 0 : index
    %76 = vector.load %arg4[%c0_33, %c0_34, %c0_35] : memref<1x1x128xf32, #tpu.memory_space<vmem>>, vector<1x1x128xf32>
    %77 = vector.shape_cast %76 : vector<1x1x128xf32> to vector<1x128xf32>
    %78 = vector.shape_cast %75 : vector<1x128xf32> to vector<1x1x128xf32>
    tpu.vector_store %arg4[%c0_33, %c0_34, %c0_35], %78 {strides = array<i32>} : memref<1x1x128xf32, #tpu.memory_space<vmem>>, vector<1x1x128xf32>,
    return
  }
  func.func @transform_0(%arg0: i32) -> (i32, i32, i32) {
    %c0_i32 = arith.constant 0 : i32
    %c0_i32_0 = arith.constant 0 : i32
    %c0_i32_1 = arith.constant 0 : i32
    return %arg0, %c0_i32, %c0_i32_0 : i32, i32, i32
  }
  func.func @transform_1(%arg0: i32) -> (i32, i32) {
    %c0_i32 = arith.constant 0 : i32
    %c0_i32_0 = arith.constant 0 : i32
    %c0_i32_1 = arith.constant 0 : i32
    return %c0_i32, %c0_i32_0 : i32, i32
  }
  func.func @transform_2(%arg0: i32) -> (i32, i32) {
    %c0_i32 = arith.constant 0 : i32
    %c0_i32_0 = arith.constant 0 : i32
    %c0_i32_1 = arith.constant 0 : i32
    return %c0_i32, %c0_i32_0 : i32, i32
  }
  func.func @transform_3(%arg0: i32) -> (i32, i32, i32) {
    %c0_i32 = arith.constant 0 : i32
    %c0_i32_0 = arith.constant 0 : i32
    %c0_i32_1 = arith.constant 0 : i32
    return %arg0, %c0_i32, %c0_i32_0 : i32, i32, i32
  }
}

</mosaic_0001>

<bundles_post_ra>
// kernel: tpu_custom_call.1
= control target key start
LH: loop header
LB: loop body
LE: loop exit
PB: predicated region body
PF: predicated region fallthrough
CT: control target
= control target key end

     0   :  { %8 = vsyncpa [#allocation3], 0  ;;  %s1556_s0 = inlined_call_operand.vmem [shape: f32[4,16,33], index: 0, kind: input, shape index: {}]   ;;  %s1557_s1 = inlined_call_operand.vmem [shape: f32[176,32], index: 1, kind: input, shape index: {}]   ;;  %s1558_s2 = inlined_call_operand.vmem [shape: f32[104,128], index: 2, kind: input, shape index: {}]   ;;  %s1559_s3 = inlined_call_operand.hbm [shape: f32[4,1,128], index: 3, kind: output, shape index: {}]  }
   0x1   :  { %10 = vsyncpa [#allocation3 + $0x1], 0  ;;  %s1208_s12 = smov 0   ;;  %s1210_s13 = smov 0  }
   0x2   :  { %s1212_s14 = smov 0   ;;  %s1214_s15 = smov 0  }
   0x3 LB: > { %s1229_s16 = sadd.s32 4294967295, %s1180_s15   ;;  %s952_s17 = sadd.s32 4294967294, %s1180_s15   ;;  %s1180_s15 = sphi %s1214_s15, %s1565_s15   ;;  %s1176_s14 = sphi %s1212_s14, %s1564_s14   ;;  %s1172_s13 = sphi %s1210_s13, %s1563_s13   ;;  %s1168_s12 = sphi %s1208_s12, %s1562_s12  }
   0x4   : > { %s1233_s18 = sadd.s32 1, %s1180_s15   ;;  %s91_s19 = sadd.s32 1, %s1176_s14 }
   0x5   : > { %s88_s20 = ssub.s32 %s1180_s15, %s1233_s18  ;;  %p101_p0 = scmp.ne.s32.totalorder %s1176_s14, %s1172_s13 }
   0x6   : > { %p89_p1 = scmp.eq.s32.totalorder %s88_s20, 0  ;;  %p102_p2 = scmp.eq.s32.totalorder %s1229_s16, 3 }
   0x7   : > { %p107_p3 = scmp.ne.s32.totalorder %s1172_s13, %s1168_s12  ;;  %p108_p4 = scmp.eq.s32.totalorder %s952_s17, 3 }
   0x8   : > { %s1244_s21 = scalar_select %p89_p1, %s1176_s14, %s91_s19  }
   0x9   : > { %p1246_p5 = por %p102_p2, %p101_p0  ;;  %p1250_p6 = por %p108_p4, %p107_p3 }
   0xa   : > { %p955_p7 = scmp.ge.s32.totalorder %s1180_s15, 1  ;;  %p140_p8 = scmp.lt.s32.totalorder %s1180_s15, 5 }
   0xc   : > { %p141_p9 = pnand %p955_p7, %p140_p8 }
   0xd   : > { %v172_v0 = vld [vmem:[%s1557_s1] sm:$0xff] (!%p141_p9)  ;;  %v173_v1 = vld [vmem:[%s1557_s1 + $0x8] sm:$0xff] (!%p141_p9)  ;;  %v174_v2 = vld [vmem:[%s1557_s1 + $0x10] sm:$0xff] (!%p141_p9)  ;;  %v1182_v3 = vmov (!%p141_p9), 0.0   ;;  %vm187_vm0 = vcmask (!%p141_p9), 1043456   ;;  %vm1183_vm1 = vmmov (!%p141_p9), 0   ;;  %v246_v32 = vlaneseq (!%p141_p9) }
   0xe   : > { %144 = sbr.rel (%p141_p9) target bundleno = 1535 (0x5ff), region = 32  ;;  %1001 = vmatprep.subr.bf16.mxu0 (!%p141_p9), %v1182_v3  ;;  %v177_v4 = vpack.c.bf16 (!%p141_p9), %v173_v1, %v172_v0  ;;  %v178_v5 = vpack.c.bf16 (!%p141_p9), %v174_v2, %v174_v2  ;;  %1005 = vmatprep.mubr.msk.bf16.mxu0 (!%p141_p9), %vm1183_vm1, %v1182_v3  ;;  %p163_p10 = scmp.lt.s32.totalorder (!%p141_p9), %s1229_s16, 3  ;;  %v1184_v6 = vmov (!%p141_p9), 24   ;;  %vm183_vm2 = vcmask (!%p141_p9), 195584   ;;  %v310_v10 = vld [vmem:[%s1557_s1 + $0x20] sm:$0xff] (!%p141_p9)  ;;  %v311_v11 = vld [vmem:[%s1557_s1 + $0x28] sm:$0xff] (!%p141_p9) }
   0xf   : > { %1117 = vset.pattern.permute.xlu0 (!%p141_p9), %v1184_v6  ;;  %1025 = vmatprep.subr.bf16.mxu1 (!%p141_p9), %v1182_v3  ;;  %v321_v12 = vpack.c.bf16 (!%p141_p9), %v311_v11, %v310_v10  ;;  %v312_v13 = vld [vmem:[%s1557_s1 + $0x30] sm:$0xff] (!%p141_p9)  ;;  %v313_v14 = vld [vmem:[%s1557_s1 + $0x38] sm:$0xff] (!%p141_p9)  ;;  %v314_v24 = vld [vmem:[%s1557_s1 + $0x40] sm:$0xff] (!%p141_p9)  ;;  %vm238_vm3 = vcmask (!%p141_p9), 261120   ;;  %v247_v33 = vshrl.u32 (!%p141_p9), %v246_v32, 7  ;;  %vm418_vm4 = vcmask (!%p141_p9), 1041408  }
  0x10   : > { %1002 = vmatpush3.bf16.msra.mxu0 (!%p141_p9), %v177_v4  ;;  %1029 = vmatprep.mubr.msk.bf16.mxu1 (!%p141_p9), %vm1183_vm1, %v1182_v3  ;;  %v189_v7 = vsel (!%p141_p9), %vm187_vm0, %v178_v5, 0  ;;  %v322_v15 = vpack.c.bf16 (!%p141_p9), %v313_v14, %v312_v13  ;;  %v958_v16 = vld [vmem:[%s1557_s1 + $0x18] ss:$0 sm:$0xff] (!%p141_p9)  ;;  %v315_v25 = vld [vmem:[%s1557_s1 + $0x48] sm:$0xff] (!%p141_p9)  ;;  %v316_v29 = vld [vmem:[%s1557_s1 + $0x50] sm:$0xff] (!%p141_p9)  ;;  %vm414_vm5 = vcmask (!%p141_p9), 162816  }
  0x11   : > { %1003 = vmatprep.subr.bf16.mxu0 (!%p141_p9), %v1182_v3  ;;  %v366_v27 = vpack.c.bf16 (!%p141_p9), %v315_v25, %v314_v24  ;;  %v317_v30 = vld [vmem:[%s1557_s1 + $0x58] sm:$0xff] (!%p141_p9)  ;;  %v256_v34 = vsub.s32 (!%p141_p9), 1, %v247_v33  ;;  %v248_v35 = vsub.s32 (!%p141_p9), 0, %v247_v33  ;;  %v264_v36 = vsub.s32 (!%p141_p9), 2, %v247_v33  ;;  %v318_v54 = vld [vmem:[%s1557_s1 + $0x60] sm:$0xf] (!%p141_p9) }
  0x12   : > { %v367_v31 = vpack.c.bf16 (!%p141_p9), %v317_v30, %v316_v29  ;;  %v272_v37 = vsub.s32 (!%p141_p9), 3, %v247_v33  ;;  %v280_v42 = vsub.s32 (!%p141_p9), 4, %v247_v33  ;;  %v288_v43 = vsub.s32 (!%p141_p9), 5, %v247_v33  ;;  %v542_v0 = vld [vmem:[%s1557_s1 + $0x68] sm:$0xff] (!%p141_p9)  ;;  %v543_v1 = vld [vmem:[%s1557_s1 + $0x70] sm:$0xff] (!%p141_p9)  ;;  %v549_v11 = vld [vmem:[%s1557_s1 + $0xa0] sm:$0xff] (!%p141_p9) }
  0x13   : > { %v296_v46 = vsub.s32 (!%p141_p9), 6, %v247_v33  ;;  %v304_v47 = vsub.s32 (!%p141_p9), 7, %v247_v33  ;;  %v409_v56 = vpack.c.bf16 (!%p141_p9), %v318_v54, %v318_v54  ;;  %v546_v2 = vld [vmem:[%s1557_s1 + $0x88] sm:$0xff] (!%p141_p9)  ;;  %v560_v4 = vpack.c.bf16 (!%p141_p9), %v543_v1, %v542_v0  ;;  %v547_v5 = vld [vmem:[%s1557_s1 + $0x90] sm:$0xff] (!%p141_p9)  ;;  %s1185_s11 = smov (!%p141_p9), 32   ;;  %s969_s8 = sshll.u32 (!%p141_p9), %s1229_s16, 4 }
  0x14   : > { %1004 = vmatpush3.bf16.msra.mxu0 (!%p141_p9), %v189_v7  ;;  %v636_v6 = vpack.c.bf16 (!%p141_p9), %v547_v5, %v546_v2  ;;  %v544_v7 = vld [vmem:[%s1557_s1 + $0x78] sm:$0xff] (!%p141_p9)  ;;  %vm578_vm6 = vcmask (!%p141_p9), 1041409   ;;  %vm580_vm7 = vcmask (!%p141_p9), 1042434   ;;  %vm582_vm8 = vcmask (!%p141_p9), 1043459   ;;  %s1187_s20 = smov (!%p141_p9), [#allocation2]  }
  0x15   : > { %s164_s30 = scalar_select %p163_p10, %s1229_s16, 3  ;;  %1009 = vmatprep.subr.bf16.mxu0 %v1182_v3  ;;  %v420_v62 = vsel %vm418_vm4, %v409_v56, 0  ;;  %vm584_vm9 = vcmask 1044484   ;;  %vm586_vm10 = vcmask 1045509   ;;  %vm588_vm11 = vcmask 1046534  }
  0x16   : > { %vm590_vm12 = vcmask 1047559   ;;  %vm816_vm13 = vcmask 523264   ;;  %vm838_vm14 = vcmask 785408   ;;  %s1122_s24 = sshll.u32 %s1187_s20, 4  ;;  %s1123_s24 = int_to_ptr.vmem [resolvable:$false] %s1122_s24 }
  0x17   : > { %s972_s4 = sshll.u32 %s164_s30, 4  ;;  %s1186_s30 = smov 64  }
  0x18   : > { %s1277_s7 = scalar_lea.vmem %s1556_s0, %s972_s4  ;;  %s161_s4 = sand.u32 1, %s1172_s13  }
  0x19   : > { %v1280_v8 = vld [vmem:[%s1277_s7] sm:$0xff]  ;;  %v170_v61 = vld [vmem:[%s1277_s7 + $0x8] sm:$0xff]  ;;  %s162_s9 = scalar_lea.vmem [#allocation2], %s161_s4  ;;  %s1514_s7 = scalar_lea.hbm %s1559_s3, %s969_s8 }
  0x1a   : > { %v176_v9 = vpack.c.bf16 %v1280_v8, %v1280_v8  ;;  %234 = vperm.xlu0 %1117, %v1280_v8   ;;  %v257_v38 = vrot.slane %v1280_v8, %v256_v34  ;;  %v249_v39 = vrot.slane %v1280_v8, %v248_v35  ;;  %v265_v40 = vrot.slane %v1280_v8, %v264_v36  ;;  %s897_s10 = sshll.u32 %s162_s9, 4  ;;  %s885_s19 = scalar_lea.sflag [#allocation3], %s161_s4  ;;  %s1516_s10 = int_to_ptr.vmem [resolvable:$true] %s897_s10 }
  0x1b   : > { %v273_v41 = vrot.slane %v1280_v8, %v272_v37  ;;  %v281_v44 = vrot.slane %v1280_v8, %v280_v42  ;;  %v289_v45 = vrot.slane %v1280_v8, %v288_v43  ;;  %v297_v48 = vrot.slane %v1280_v8, %v296_v46  ;;  %s1118_s16 = scalar_lea.vmem %s1516_s10, 16  ;;  %s1124_s25 = scalar_lea.vmem %s1123_s24, 32 }
  0x1c   : > { %1006 = vmatmul.mubr.msk.bf16.vlgmr.msra.gmra.mrb[0].mxu0 %vm183_vm2, %v176_v9  ;;  %260 = vbcast.lane.b32.xlu1 %v257_v38, 281  ;;  %v305_v49 = vrot.slane %v1280_v8, %v304_v47  ;;  %v1343_v63 = vpack.c.bf16 %v170_v61, %v170_v61  ;;  %v545_v8 = vld [vmem:[%s1557_s1 + $0x80] sm:$0xff]  ;;  %v548_v9 = vld [vmem:[%s1557_s1 + $0x98] sm:$0xff]  ;;  %p1119_p11 = scmp.ne.s32.totalorder %s1516_s10, %s1118_s16  ;;  %p1125_p0 = scmp.lt.s32.totalorder %s1516_s10, %s1123_s24 }
  0x1d   : > { %1013 = vmatprep.mubr.msk.bf16.mxu0 %vm1183_vm1, %v1182_v3  ;;  %1010 = vmatpush3.bf16.msra.mxu0 %v321_v12  ;;  %v561_v10 = vpack.c.bf16 %v545_v8, %v544_v7  ;;  %v637_v12 = vpack.c.bf16 %v549_v11, %v548_v9  ;;  %p1126_p1 = scmp.lt.s32.totalorder %s1124_s25, %s1118_s16 }
  0x1e   : > { %1011 = vmatprep.subr.bf16.mxu0 %v1182_v3  ;;  %252 = vbcast.lane.b32.xlu0 %v249_v39, 281  ;;  %p1120_p12 = pnand %p1119_p11, %p1246_p5 }
  0x1f   : > { %p1127_p2 = por %p1126_p1, %p1125_p0 }
  0x20   : > { %268 = vbcast.lane.b32.xlu1 %v265_v40, 281  ;;  %p1121_p13 = pneg %p1120_p12 }
  0x21   : > { %1012 = vmatpush3.bf16.msra.mxu0 %v322_v15 }
  0x22   : > { %1017 = vmatprep.subr.bf16.mxu0 %v1182_v3  ;;  %276 = vbcast.lane.b32.xlu0 %v273_v41, 281  ;;  %p1128_p3 = pnand %p1127_p2, %p1121_p13 }
  0x24   : > { %284 = vbcast.lane.b32.xlu1 %v281_v44, 281 }
  0x26   : > { %292 = vbcast.lane.b32.xlu0 %v289_v45, 281 }
  0x28   : > { %300 = vbcast.lane.b32.xlu1 %v297_v48, 281 }
  0x2a   : > { %308 = vbcast.lane.b32.xlu0 %v305_v49, 281 }
  0x8e   : > { %v1378_v13 = vpop.permute.xlu1 %260 }
  0x92   : > { %v1382_v15 = vpop.permute.xlu1 %268 }
  0x99   : > { %v235_v21 = vpop.permute.xlu0 %234 }
  0x9d   : > { %v1380_v14 = vpop.permute.xlu0 %252 }
  0xef   : > { %v225_v17 = vpop.f32.mrb[0].mxu0 }
  0xf0   : > { %v226_v18 = vadd.f32 %v958_v16, %v225_v17  ;;  %v1007_v19 = vpop.f32.mrb[1].mxu0  ;;  %v1384_v16 = vpop.permute.xlu0 %276 }
  0xf1   : > { %v228_v20 = vpop.f32.mrb[2].mxu0  ;;  %v1386_v17 = vpop.permute.xlu1 %284  ;;  %v962_v19 = vld [vmem:[%s1557_s1 + $0x64] ss:$0 sm:$0xff] }
  0xf2   : > { %v231_v22 = vmax.f32 %v226_v18, 0.0  ;;  %v1008_v23 = vpop.f32.mrb[3].mxu0 }
  0xf4   : > { %v1311_v26 = vmul.f32 %v235_v21, %v231_v22  ;;  %v1388_v18 = vpop.permute.xlu0 %292 }
  0xf5   : > { %v1393_v23 = vpop.permute.xlu1 %300 }
  0xf6   : > { %v320_v28 = vpack.c.bf16 %v1311_v26, %v1311_v26 }
  0xf8   : > { %1014 = vmatmul.mubr.msk.bf16.vlgmr.msra.gmra.mrb[4].mxu0 %vm238_vm3, %v320_v28  ;;  %v1395_v25 = vpop.permute.xlu0 %308 }
  0xf9   : > { %1018 = vmatpush3.bf16.msra.mxu0 %v366_v27  ;;  %1021 = vmatprep.mubr.msk.bf16.mxu0 %vm1183_vm1, %v1182_v3 }
  0xfa   : > { %1019 = vmatprep.subr.bf16.mxu0 %v1182_v3 }
  0xfd   : > { %1020 = vmatpush3.bf16.msra.mxu0 %v367_v31 }
  0xfe   : > { %1033 = vmatprep.subr.bf16.mxu0 %v1182_v3 }
 0x100   : > { %1022 = vmatmul.mubr.msk.bf16.vlgmr.msra.gmra.mrb[8].mxu0 %vm238_vm3, %v320_v28 }
 0x101   : > { %1037 = vmatprep.mubr.msk.bf16.mxu0 %vm1183_vm1, %v1182_v3  ;;  %1034 = vmatpush3.bf16.msra.mxu0 %v560_v4 }
 0x102   : > { %1035 = vmatprep.subr.bf16.mxu0 %v1182_v3 }
 0x105   : > { %1036 = vmatpush3.bf16.msra.mxu0 %v561_v10 }
 0x106   : > { %1049 = vmatprep.subr.bf16.mxu0 %v1182_v3 }
 0x1cb   : > { %v360_v50 = vpop.f32.mrb[4].mxu0 }
 0x1cc   : > { %v1015_v51 = vpop.f32.mrb[5].mxu0 }
 0x1cd   : > { %v363_v52 = vpop.f32.mrb[6].mxu0 }
 0x1ce   : > { %v1016_v53 = vpop.f32.mrb[7].mxu0 }
 0x1d3   : > { %v402_v55 = vpop.f32.mrb[8].mxu0 }
 0x1d4   : > { %v408_v57 = vpack.c.bf16 %v402_v55, %v360_v50  ;;  %v1023_v58 = vpop.f32.mrb[9].mxu0 }
 0x1d5   : > { %v405_v59 = vpop.f32.mrb[10].mxu0 }
 0x1d6   : > { %v1024_v60 = vpop.f32.mrb[11].mxu0  ;;  %1026 = vmatpush3.bf16.msra.mxu1 %v408_v57 }
 0x1d7   : > { %1027 = vmatprep.subr.bf16.mxu1 %v1182_v3 }
 0x1da   : > { %1028 = vmatpush3.bf16.msra.mxu1 %v420_v62 }
 0x1db   : > { %1041 = vmatprep.subr.bf16.mxu1 %v1182_v3 }
 0x1dd   : > { %1030 = vmatmul.mubr.msk.bf16.vlgmr.msra.gmra.mrb[0].mxu1 %vm414_vm5, %v1343_v63 }
 0x1de   : > { %1045 = vmatprep.mubr.msk.bf16.mxu1 %vm1183_vm1, %v1182_v3  ;;  %1042 = vmatpush3.bf16.msra.mxu1 %v636_v6 }
 0x1df   : > { %1043 = vmatprep.subr.bf16.mxu1 %v1182_v3 }
 0x1e2   : > { %1044 = vmatpush3.bf16.msra.mxu1 %v637_v12 }
 0x1e3   : > { %1057 = vmatprep.subr.bf16.mxu1 %v1182_v3 }
 0x2b0   : > { %v456_v20 = vpop.f32.mrb[0].mxu1 }
 0x2b1   : > { %v457_v21 = vadd.f32 %v962_v19, %v456_v20  ;;  %v1031_v22 = vpop.f32.mrb[1].mxu1 }
 0x2b2   : > { %v459_v24 = vpop.f32.mrb[2].mxu1 }
 0x2b3   : > { %v462_v27 = vmax.f32 %v457_v21, 0.0  ;;  %v1032_v28 = vpop.f32.mrb[3].mxu1 }
 0x2b5   : > { %v469_v29 = vmul.f32 %v462_v27, %v1393_v23  ;;  %v470_v30 = vmul.f32 %v462_v27, %v1395_v25  ;;  %v463_v31 = vmul.f32 %v462_v27, %v1380_v14  ;;  %v464_v32 = vmul.f32 %v462_v27, %v1378_v13 }
 0x2b6   : > { %v465_v33 = vmul.f32 %v462_v27, %v1382_v15  ;;  %v466_v34 = vmul.f32 %v462_v27, %v1384_v16  ;;  %v467_v35 = vmul.f32 %v462_v27, %v1386_v17  ;;  %v468_v36 = vmul.f32 %v462_v27, %v1388_v18 }
 0x2b7   : > { %v513_v37 = vsel %vm238_vm3, %v469_v29, -inf  ;;  %v520_v38 = vsel %vm238_vm3, %v470_v30, -inf  ;;  %v471_v39 = vsel %vm238_vm3, %v463_v31, -inf  ;;  %v478_v40 = vsel %vm238_vm3, %v464_v32, -inf }
 0x2b8   : > { %v514_v41 = vrot.slane %v513_v37, 4  ;;  %v521_v42 = vrot.slane %v520_v38, 4  ;;  %v472_v43 = vrot.slane %v471_v39, 4  ;;  %v479_v44 = vrot.slane %v478_v40, 4 }
 0x2b9   : > { %v485_v45 = vsel %vm238_vm3, %v465_v33, -inf  ;;  %v492_v46 = vsel %vm238_vm3, %v466_v34, -inf  ;;  %v499_v47 = vsel %vm238_vm3, %v467_v35, -inf  ;;  %v506_v48 = vsel %vm238_vm3, %v468_v36, -inf }
 0x2ba   : > { %v515_v49 = vmax.f32 %v513_v37, %v514_v41  ;;  %v522_v50 = vmax.f32 %v520_v38, %v521_v42  ;;  %v473_v51 = vmax.f32 %v471_v39, %v472_v43  ;;  %v480_v52 = vmax.f32 %v478_v40, %v479_v44 }
 0x2bb   : > { %v486_v53 = vrot.slane %v485_v45, 4  ;;  %v493_v54 = vrot.slane %v492_v46, 4  ;;  %v500_v55 = vrot.slane %v499_v47, 4  ;;  %v507_v56 = vrot.slane %v506_v48, 4 }
 0x2bc   : > { %v516_v57 = vrot.slane %v515_v49, 2  ;;  %v523_v58 = vrot.slane %v522_v50, 2  ;;  %v474_v59 = vrot.slane %v473_v51, 2  ;;  %v481_v60 = vrot.slane %v480_v52, 2 }
 0x2bd   : > { %v487_v61 = vmax.f32 %v485_v45, %v486_v53  ;;  %v494_v62 = vmax.f32 %v492_v46, %v493_v54  ;;  %v501_v0 = vmax.f32 %v499_v47, %v500_v55  ;;  %v508_v1 = vmax.f32 %v506_v48, %v507_v56 }
 0x2be   : > { %v517_v2 = vmax.f32 %v515_v49, %v516_v57  ;;  %v524_v4 = vmax.f32 %v522_v50, %v523_v58  ;;  %v475_v5 = vmax.f32 %v473_v51, %v474_v59  ;;  %v482_v6 = vmax.f32 %v480_v52, %v481_v60 }
 0x2bf   : > { %v488_v7 = vrot.slane %v487_v61, 2  ;;  %v495_v8 = vrot.slane %v494_v62, 2  ;;  %v502_v9 = vrot.slane %v501_v0, 2  ;;  %v509_v10 = vrot.slane %v508_v1, 2 }
 0x2c0   : > { %v518_v11 = vrot.slane %v517_v2, 1  ;;  %v525_v12 = vrot.slane %v524_v4, 1  ;;  %v476_v19 = vrot.slane %v475_v5, 1  ;;  %v483_v20 = vrot.slane %v482_v6, 1 }
 0x2c1   : > { %v489_v21 = vmax.f32 %v487_v61, %v488_v7  ;;  %v496_v22 = vmax.f32 %v494_v62, %v495_v8  ;;  %v503_v24 = vmax.f32 %v501_v0, %v502_v9  ;;  %v510_v27 = vmax.f32 %v508_v1, %v509_v10 }
 0x2c2   : > { %v519_v28 = vmax.f32 %v517_v2, %v518_v11  ;;  %v526_v29 = vmax.f32 %v524_v4, %v525_v12  ;;  %v477_v30 = vmax.f32 %v475_v5, %v476_v19  ;;  %v484_v31 = vmax.f32 %v482_v6, %v483_v20 }
 0x2c3   : > { %v490_v32 = vrot.slane %v489_v21, 1  ;;  %v497_v33 = vrot.slane %v496_v22, 1  ;;  %v504_v34 = vrot.slane %v503_v24, 1  ;;  %v511_v35 = vrot.slane %v510_v27, 1 }
 0x2c4   : > { %v527_v36 = vsel %vm238_vm3, %v477_v30, -inf  ;;  %v528_v37 = vsel %vm238_vm3, %v484_v31, -inf  ;;  %v535_v42 = vsel %vm238_vm3, %v519_v28, -inf  ;;  %v537_v43 = vsel %vm238_vm3, %v526_v29, -inf }
 0x2c5   : > { %v491_v38 = vmax.f32 %v489_v21, %v490_v32  ;;  %v498_v39 = vmax.f32 %v496_v22, %v497_v33  ;;  %v505_v40 = vmax.f32 %v503_v24, %v504_v34  ;;  %v512_v41 = vmax.f32 %v510_v27, %v511_v35  ;;  %v550_v24 = vld [vmem:[%s1557_s1 + $0xa8] sm:$0xf] }
 0x2c6   : > { %v552_v52 = vpack.c.bf16 %v477_v30, %v477_v30  ;;  %v553_v53 = vpack.c.bf16 %v484_v31, %v484_v31  ;;  %v558_v0 = vpack.c.bf16 %v519_v28, %v519_v28  ;;  %v559_v2 = vpack.c.bf16 %v526_v29, %v526_v29 }
 0x2c7   : > { %v529_v44 = vsel %vm238_vm3, %v491_v38, -inf  ;;  %v530_v45 = vsel %vm238_vm3, %v498_v39, -inf  ;;  %v531_v46 = vsel %vm238_vm3, %v505_v40, -inf  ;;  %v533_v47 = vsel %vm238_vm3, %v512_v41, -inf }
 0x2c8   : > { %v532_v48 = vmax.f32 %v527_v36, %v531_v46  ;;  %v534_v49 = vmax.f32 %v528_v37, %v533_v47  ;;  %v536_v50 = vmax.f32 %v529_v44, %v535_v42  ;;  %v538_v51 = vmax.f32 %v530_v45, %v537_v43  ;;  %v821_v42 = vld [vmem:[%s1558_s2 + $0x18] sm:$0xff]  ;;  %v823_v44 = vld [vmem:[%s1558_s2 + $0x28] sm:$0xff]  ;;  %v824_v46 = vld [vmem:[%s1558_s2 + $0x30] sm:$0xff] }
 0x2c9   : > { %v554_v54 = vpack.c.bf16 %v491_v38, %v491_v38  ;;  %v555_v55 = vpack.c.bf16 %v498_v39, %v498_v39  ;;  %v556_v58 = vpack.c.bf16 %v505_v40, %v505_v40  ;;  %v557_v59 = vpack.c.bf16 %v512_v41, %v512_v41  ;;  %v818_v38 = vld [vmem:[%s1558_s2] sm:$0xff]  ;;  %v819_v39 = vld [vmem:[%s1558_s2 + $0x8] sm:$0xff]  ;;  %v820_v40 = vld [vmem:[%s1558_s2 + $0x10] sm:$0xff] }
 0x2ca   : > { %v539_v56 = vmax.f32 %v532_v48, %v534_v49  ;;  %v540_v57 = vmax.f32 %v536_v50, %v538_v51  ;;  %v570_v60 = vunpack.c.l.b16 %v552_v52  ;;  %v571_v61 = vunpack.c.l.b16 %v553_v53  ;;  %v825_v47 = vld [vmem:[%s1558_s2 + $0x38] sm:$0xff]  ;;  %v826_v49 = vld [vmem:[%s1558_s2 + $0x40] sm:$0xff]  ;;  %v827_v50 = vld [vmem:[%s1558_s2 + $0x48] sm:$0xff] }
 0x2cb   : > { %v572_v62 = vunpack.c.l.b16 %v554_v54  ;;  %v573_v4 = vunpack.c.l.b16 %v555_v55  ;;  %v574_v6 = vunpack.c.l.b16 %v556_v58  ;;  %v575_v8 = vunpack.c.l.b16 %v557_v59  ;;  %v966_v52 = vld [vmem:[%s1557_s1 + $0xac] ss:$0 sm:$0xff] }
 0x2cc   : > { %v541_v1 = vmax.f32 %v539_v56, %v540_v57  ;;  %v579_v5 = vsel %vm578_vm6, %v571_v61, %v570_v60  ;;  %v576_v10 = vunpack.c.l.b16 %v558_v0  ;;  %v577_v12 = vunpack.c.l.b16 %v559_v2 }
 0x2cd   : > { %v581_v7 = vsel %vm580_vm7, %v572_v62, %v579_v5  ;;  %v679_v29 = vpack.c.bf16 %v550_v24, %v550_v24  ;;  %v832_v41 = vpack.c.bf16 %v819_v39, %v818_v38  ;;  %v833_v43 = vpack.c.bf16 %v821_v42, %v820_v40 }
 0x2ce   : > { %808 = vrot.lane.b32.xlu1 %v541_v1, %s1185_s11  ;;  %v583_v9 = vsel %vm582_vm8, %v573_v4, %v581_v7  ;;  %v835_v48 = vpack.c.bf16 %v825_v47, %v824_v46  ;;  %v836_v51 = vpack.c.bf16 %v827_v50, %v826_v49 }
 0x2cf   : > { %v585_v11 = vsel %vm584_vm9, %v574_v6, %v583_v9  ;;  %v685_v37 = vsel %vm418_vm4, %v679_v29, 0 }
 0x2d0   : > { %v587_v19 = vsel %vm586_vm10, %v575_v8, %v585_v11 }
 0x2d1   : > { %v589_v20 = vsel %vm588_vm11, %v576_v10, %v587_v19 }
 0x2d2   : > { %v591_v21 = vsel %vm590_vm12, %v577_v12, %v589_v20 }
 0x2d3   : > { %v592_v22 = vpack.c.b16 %v591_v21, %v591_v21 }
 0x2d5   : > { %1038 = vmatmul.mubr.msk.bf16.vlgmr.msra.gmra.mrb[12].mxu0 %vm238_vm3, %v592_v22  ;;  %1046 = vmatmul.mubr.msk.bf16.vlgmr.msra.gmra.mrb[4].mxu1 %vm238_vm3, %v592_v22 }
 0x2d6   : > { %1053 = vmatprep.mubr.msk.bf16.mxu0 %vm1183_vm1, %v1182_v3  ;;  %1069 = vmatprep.mubr.msk.bf16.mxu1 %vm1183_vm1, %v1182_v3 }
 0x2d7   : > { %1058 = vmatpush3.bf16.msra.mxu1 %v832_v41 }
 0x2d8   : > { %1059 = vmatprep.subr.bf16.mxu1 %v1182_v3 }
 0x2db   : > { %1060 = vmatpush3.bf16.msra.mxu1 %v833_v43 }
 0x2dc   : > { %1061 = vmatprep.subr.bf16.mxu1 %v1182_v3 }
 0x3a8   : > { %v630_v27 = vpop.f32.mrb[12].mxu0  ;;  %v672_v28 = vpop.f32.mrb[4].mxu1 }
 0x3a9   : > { %v678_v30 = vpack.c.bf16 %v672_v28, %v630_v27  ;;  %v1039_v31 = vpop.f32.mrb[13].mxu0  ;;  %v1047_v32 = vpop.f32.mrb[5].mxu1 }
 0x3aa   : > { %v633_v33 = vpop.f32.mrb[14].mxu0  ;;  %v675_v34 = vpop.f32.mrb[6].mxu1 }
 0x3ab   : > { %v1040_v35 = vpop.f32.mrb[15].mxu0  ;;  %v1048_v36 = vpop.f32.mrb[7].mxu1  ;;  %1050 = vmatpush3.bf16.msra.mxu0 %v678_v30 }
 0x3ac   : > { %1051 = vmatprep.subr.bf16.mxu0 %v1182_v3 }
 0x3af   : > { %1052 = vmatpush3.bf16.msra.mxu0 %v685_v37 }
 0x3b2   : > { %1054 = vmatmul.mubr.msk.bf16.vlgmr.msra.gmra.mrb[16].mxu0 %vm414_vm5, %v1343_v63  ;;  %v822_v63 = vld [vmem:[%s1558_s2 + $0x20] sm:$0xff] }
 0x3b3   : > { %v834_v45 = vpack.c.bf16 %v823_v44, %v822_v63 }
 0x3b5   : > { %1062 = vmatpush3.bf16.msra.mxu1 %v834_v45 }
 0x3b6   : > { %1063 = vmatprep.subr.bf16.mxu1 %v1182_v3 }
 0x3b9   : > { %1064 = vmatpush3.bf16.msra.mxu1 %v835_v48 }
 0x3ba   : > { %1065 = vmatprep.subr.bf16.mxu1 %v1182_v3 }
 0x3bd   : > { %1066 = vmatpush3.bf16.msra.mxu1 %v836_v51 }
 0x3be   : > { %1067 = vmatprep.subr.bf16.mxu1 %v1182_v3 }
 0x485   : > { %v721_v53 = vpop.f32.mrb[16].mxu0 }
 0x486   : > { %v722_v54 = vadd.f32 %v966_v52, %v721_v53  ;;  %v1055_v55 = vpop.f32.mrb[17].mxu0 }
 0x487   : > { %v724_v56 = vpop.f32.mrb[18].mxu0 }
 0x488   : > { %v727_v57 = vmax.f32 %v722_v54, 0.0  ;;  %v1056_v58 = vpop.f32.mrb[19].mxu0  ;;  %v828_v56 = vld [vmem:[%s1558_s2 + $0x50] sm:$0xff] }
 0x48a   : > { %v728_v59 = vmul.f32 %v727_v57, %v1380_v14  ;;  %v729_v60 = vmul.f32 %v727_v57, %v1378_v13  ;;  %v730_v61 = vmul.f32 %v727_v57, %v1382_v15  ;;  %v731_v62 = vmul.f32 %v727_v57, %v1384_v16 }
 0x48b   : > { %v732_v3 = vmul.f32 %v727_v57, %v1386_v17  ;;  %v733_v0 = vmul.f32 %v727_v57, %v1388_v18  ;;  %v734_v1 = vmul.f32 %v727_v57, %v1393_v23  ;;  %v735_v2 = vmul.f32 %v727_v57, %v1395_v25  ;;  %v829_v57 = vld [vmem:[%s1558_s2 + $0x58] sm:$0xff] }
 0x48c   : > { %v736_v4 = vsel %vm238_vm3, %v728_v59, -inf  ;;  %v743_v5 = vsel %vm238_vm3, %v729_v60, -inf  ;;  %v750_v14 = vsel %vm238_vm3, %v730_v61, -inf  ;;  %v757_v13 = vsel %vm238_vm3, %v731_v62, -inf }
 0x48d   : > { %v737_v6 = vrot.slane %v736_v4, 4  ;;  %v744_v15 = vrot.slane %v743_v5, 4  ;;  %v751_v7 = vrot.slane %v750_v14, 4  ;;  %v758_v16 = vrot.slane %v757_v13, 4 }
 0x48e   : > { %v764_v17 = vsel %vm238_vm3, %v732_v3, -inf  ;;  %v771_v18 = vsel %vm238_vm3, %v733_v0, -inf  ;;  %v778_v23 = vsel %vm238_vm3, %v734_v1, -inf  ;;  %v785_v25 = vsel %vm238_vm3, %v735_v2, -inf }
 0x48f   : > { %v738_v8 = vmax.f32 %v736_v4, %v737_v6  ;;  %v745_v9 = vmax.f32 %v743_v5, %v744_v15  ;;  %v752_v10 = vmax.f32 %v750_v14, %v751_v7  ;;  %v759_v11 = vmax.f32 %v757_v13, %v758_v16 }
 0x490   : > { %v765_v12 = vrot.slane %v764_v17, 4  ;;  %v772_v19 = vrot.slane %v771_v18, 4  ;;  %v779_v20 = vrot.slane %v778_v23, 4  ;;  %v786_v21 = vrot.slane %v785_v25, 4 }
 0x491   : > { %v739_v22 = vrot.slane %v738_v8, 2  ;;  %v746_v24 = vrot.slane %v745_v9, 2  ;;  %v753_v27 = vrot.slane %v752_v10, 2  ;;  %v760_v28 = vrot.slane %v759_v11, 2 }
 0x492   : > { %v766_v29 = vmax.f32 %v764_v17, %v765_v12  ;;  %v773_v30 = vmax.f32 %v771_v18, %v772_v19  ;;  %v780_v31 = vmax.f32 %v778_v23, %v779_v20  ;;  %v787_v32 = vmax.f32 %v785_v25, %v786_v21  ;;  %v809_v19 = vpop.permute.xlu1 %808 }
 0x493   : > { %v740_v33 = vmax.f32 %v738_v8, %v739_v22  ;;  %v747_v34 = vmax.f32 %v745_v9, %v746_v24  ;;  %v754_v35 = vmax.f32 %v752_v10, %v753_v27  ;;  %v761_v36 = vmax.f32 %v759_v11, %v760_v28 }
 0x494   : > { %v767_v37 = vrot.slane %v766_v29, 2  ;;  %v774_v38 = vrot.slane %v773_v30, 2  ;;  %v781_v39 = vrot.slane %v780_v31, 2  ;;  %v788_v40 = vrot.slane %v787_v32, 2 }
 0x495   : > { %v741_v41 = vrot.slane %v740_v33, 1  ;;  %v748_v42 = vrot.slane %v747_v34, 1  ;;  %v755_v43 = vrot.slane %v754_v35, 1  ;;  %v762_v63 = vrot.slane %v761_v36, 1 }
 0x496   : > { %v768_v44 = vmax.f32 %v766_v29, %v767_v37  ;;  %v775_v45 = vmax.f32 %v773_v30, %v774_v38  ;;  %v782_v46 = vmax.f32 %v780_v31, %v781_v39  ;;  %v789_v47 = vmax.f32 %v787_v32, %v788_v40 }
 0x497   : > { %v742_v48 = vmax.f32 %v740_v33, %v741_v41  ;;  %v749_v49 = vmax.f32 %v747_v34, %v748_v42  ;;  %v756_v50 = vmax.f32 %v754_v35, %v755_v43  ;;  %v763_v51 = vmax.f32 %v761_v36, %v762_v63 }
 0x498   : > { %v769_v52 = vrot.slane %v768_v44, 1  ;;  %v776_v53 = vrot.slane %v775_v45, 1  ;;  %v783_v54 = vrot.slane %v782_v46, 1  ;;  %v790_v55 = vrot.slane %v789_v47, 1 }
 0x499   : > { %v792_v58 = vsel %vm238_vm3, %v742_v48, -inf  ;;  %v793_v59 = vsel %vm238_vm3, %v749_v49, -inf  ;;  %v794_v60 = vsel %vm238_vm3, %v756_v50, -inf  ;;  %v795_v61 = vsel %vm238_vm3, %v763_v51, -inf }
 0x49a   : > { %v770_v62 = vmax.f32 %v768_v44, %v769_v52  ;;  %v777_v3 = vmax.f32 %v775_v45, %v776_v53  ;;  %v784_v0 = vmax.f32 %v782_v46, %v783_v54  ;;  %v791_v1 = vmax.f32 %v789_v47, %v790_v55 }
 0x49b   : > { %v837_v2 = vpack.c.bf16 %v829_v57, %v828_v56  ;;  %v239_v25 = vsel %vm238_vm3, %v1311_v26, -inf  ;;  %v830_v26 = vld [vmem:[%s1558_s2 + $0x60] sm:$0x1] }
 0x49c   : > { %v796_v4 = vsel %vm238_vm3, %v770_v62, -inf  ;;  %v798_v5 = vsel %vm238_vm3, %v777_v3, -inf  ;;  %v800_v14 = vsel %vm238_vm3, %v784_v0, -inf  ;;  %v802_v13 = vsel %vm238_vm3, %v791_v1, -inf }
 0x49d   : > { %v797_v6 = vmax.f32 %v792_v58, %v796_v4  ;;  %v799_v15 = vmax.f32 %v793_v59, %v798_v5  ;;  %v801_v7 = vmax.f32 %v794_v60, %v800_v14  ;;  %v803_v16 = vmax.f32 %v795_v61, %v802_v13  ;;  %1068 = vmatpush3.bf16.msra.mxu1 %v837_v2 }
 0x49e   : > { %v240_v8 = vrot.slane %v239_v25, 4 }
 0x49f   : > { %v804_v17 = vmax.f32 %v797_v6, %v799_v15  ;;  %v805_v18 = vmax.f32 %v801_v7, %v803_v16 }
 0x4a0   : > { %v241_v9 = vmax.f32 %v239_v25, %v240_v8 }
 0x4a1   : > { %v806_v23 = vmax.f32 %v804_v17, %v805_v18 }
 0x4a2   : > { %v242_v10 = vrot.slane %v241_v9, 2 }
 0x4a3   : > { %812 = vrot.lane.b32.xlu0 %v806_v23, %s1186_s30 }
 0x4a4   : > { %v243_v11 = vmax.f32 %v241_v9, %v242_v10 }
 0x4a6   : > { %v244_v12 = vrot.slane %v243_v11, 1 }
 0x4a8   : > { %v245_v20 = vmax.f32 %v243_v11, %v244_v12 }
 0x4aa   : > { %v815_v21 = vsel %vm238_vm3, %v245_v20, %v809_v19 }
 0x515   : > { %v813_v22 = vpop.permute.xlu0 %812 }
 0x516   : > { %v817_v24 = vsel %vm816_vm13, %v815_v21, %v813_v22 }
 0x517   : > { %v831_v27 = vpack.c.bf16 %v817_v24, %v817_v24 }
 0x519   : > { %1070 = vmatmul.mubr.msk.bf16.vlgmr.msra.gmra.mrb[8].mxu1 %vm838_vm14, %v831_v27 }
 0x5ec   : > { %v876_v28 = vpop.f32.mrb[8].mxu1 }
 0x5ed   : > { %v877_v29 = vadd.f32 %v876_v28, %v830_v26  ;;  %v1071_v30 = vpop.f32.mrb[9].mxu1 }
 0x5ee   : > { %v879_v31 = vpop.f32.mrb[10].mxu1 }
 0x5ef   : > { %v882_v32 = vmax.f32 %v877_v29, 0.0  ;;  %v1072_v33 = vpop.f32.mrb[11].mxu1 }
 0x5f1   : > { %883 = vst [vmem:[%s162_s9] sm:$0x1] %v882_v32 }
 0x5f2   : > { %1131 = shalt.err (!%p1128_p3)
}
 0x5f3   : > { %s1132_s26 = scalar_lea.hbm %s1514_s7, 16  ;;  %s1136_s29 = scalar_lea.hbm %s1559_s3, 64 }
 0x5f4   : > { %p1133_p4 = scmp.ne.s32.totalorder %s1514_s7, %s1132_s26  ;;  %p1137_p9 = scmp.lt.u32.totalorder %s1514_s7, %s1559_s3 }
 0x5f5   : > { %p1138_p10 = scmp.lt.u32.totalorder %s1136_s29, %s1132_s26  ;;  %p1140_p12 = scmp.lt.u32.totalorder %s1132_s26, %s1514_s7 }
 0x5f6   : > { %p1134_p7 = pnand %p1133_p4, %p1246_p5 }
 0x5f7   : > { %p1139_p11 = por %p1138_p10, %p1137_p9 }
 0x5f8   : > { %p1135_p8 = pneg %p1134_p7 }
 0x5f9   : > { %p1141_p13 = por %p1140_p12, %p1139_p11 }
 0x5fb   : > { %p1142_p0 = pnand %p1141_p13, %p1135_p8 }
 0x5fd   : > { %1145 = shalt.err (!%p1142_p0)
}
 0x5fe   : > { %1073 = dma.vmem_to_hbm [thread:$0]  (%p1246_p5), %s1516_s10, 16, %s1514_s7, %s885_s19  }
 0x5ff PF: > { %p1079_p1 = scmp.ge.s32.totalorder %s1180_s15, 2  ;;  %s909_s5 = sand.u32 1, %s1168_s12  }
 0x600   : > { %s910_s6 = scalar_lea.sflag [#allocation3], %s909_s5 }
 0x601   : > { %p1076_p2 = pnand %p1079_p1, %p1250_p6 }
 0x603   : > { %1163 = dma.done.wait (!%p1076_p2), %s910_s6, 16  }
 0x604   : > { %1165 = vsyncadd (!%p1076_p2), %s910_s6, 4294967280  ;;  %p13_p3 = scmp.ge.s32.totalorder %s1233_s18, 6   ;;  %s1562_s12 = smov %s1172_s13 }
 0x605   : > { %s1563_s13 = smov %s1176_s14  ;;  %s1564_s14 = smov %s1244_s21 }
 0x606   : > { %s1565_s15 = smov %s1233_s18  ;;  %15 = sbr.rel (!%p13_p3) target bundleno = 3 (0x3), region = 67 }
 0x60d   :  { %914 = vsyncpa [#allocation3], 1 }
 0x60e   :  { %916 = vsyncpa [#allocation3 + $0x1], 1 }

</bundles_post_ra>
